<compile_context>
chip_gen: v7x
topology: tpu7x:2x2x1
jax: 0.10.0
libtpu: 0.0.40
codegen_flags: <defaults>
</compile_context>

<pallas_src>
import jax
import jax.numpy as jnp
from jax.experimental import pallas as pl
from jax.experimental.pallas import tpu as pltpu

IN_DIM = 2
HID_DIM = 50
HID_PAD = 56          # 50 -> 56: exactly 7 full sublane groups, no masked partial tiles
OUT_DIM = 2
LANE = 128
SUB_B = 256           # lanes per in-kernel sub-tile (h f32 = 14 vregs -> stays in registers)
MAX_BLOCK_B = 8192    # batch-tile cap; VMEM per block is well under 1 MiB even here


def odefunc_kernel(y_ref, w1_ref, b1_ref, w2_ref, b2_ref, o_ref):
    # y_ref: (IN_DIM, block_b), o_ref: (OUT_DIM, block_b) -- batch on the lane axis.
    block_b = y_ref.shape[1]
    sub_b = SUB_B if block_b % SUB_B == 0 else LANE
    n_sub = block_b // sub_b

    # Tiny parameters: load once per grid step, hoisted out of the chunk loop.
    w1a = w1_ref[:, 0:1]          # (HID_PAD, 1)
    w1b = w1_ref[:, 1:2]          # (HID_PAD, 1)
    b1 = b1_ref[...]              # (HID_PAD, 1)
    w2 = w2_ref[...]              # (OUT_DIM, HID_PAD)
    b2 = b2_ref[...]              # (OUT_DIM, 1)

    # Chunk the batch so h (HID_PAD x sub_b) never round-trips through VMEM.
    for c in range(n_sub):
        off = c * sub_b                               # static -> aligned, free slices
        y0 = y_ref[0:1, off:off + sub_b]              # (1, sub_b)
        y1 = y_ref[1:2, off:off + sub_b]              # (1, sub_b)

        # Layer 1 (K=2) on the VPU: two broadcast-FMAs, bias folded into the first.
        h = w1a * y0 + b1                             # (HID_PAD, sub_b)
        h = h + w1b * y1
        h = jnp.maximum(h, 0.0)                       # ReLU

        # Layer 2 (K=HID_PAD) on the MXU; lane-dense output store.
        out = jnp.dot(w2, h, preferred_element_type=jnp.float32)   # (OUT_DIM, sub_b)
        o_ref[:, off:off + sub_b] = (out + b2).astype(o_ref.dtype)


def _pick_block_b(b_pad, cap):
    """Largest lane-multiple tile dividing b_pad, <= cap, preferring >=2 grid steps
    (so both TensorCores get work on v7x / megacore sharding on v6e)."""
    cap = max(LANE, min(cap, b_pad))
    best = LANE
    best_multi = None
    blk = LANE
    while blk <= cap:
        if b_pad % blk == 0:
            best = blk
            if 2 * blk <= b_pad:
                best_multi = blk
        blk += LANE
    return best_multi if best_multi is not None else best


def prepare_params(w1, b1, w2, b2):
    """Pad hidden dim 50 -> 56 with zeros (exact) once, outside any solver loop."""
    pad = HID_PAD - HID_DIM
    w1p = jnp.pad(jnp.asarray(w1, jnp.float32), ((0, pad), (0, 0)))
    b1p = jnp.pad(jnp.asarray(b1, jnp.float32).reshape(HID_DIM, 1), ((0, pad), (0, 0)))
    w2p = jnp.pad(jnp.asarray(w2, jnp.float32), ((0, 0), (0, pad)))
    b2p = jnp.asarray(b2, jnp.float32).reshape(OUT_DIM, 1)
    return w1p, b1p, w2p, b2p


def odefunc_rhs_t(y_t, params, *, block_b=MAX_BLOCK_B):
    """RHS in solver-friendly layout: y_t (IN_DIM, B_pad) -> (OUT_DIM, B_pad), f32.

    B_pad must be a multiple of 128.  An ODE solver should keep its state in this
    transposed, lane-padded layout for the whole integration (transpose/pad once
    outside the loop) so each RHS call is a single pallas launch with no host-side
    layout churn.
    """
    w1p, b1p, w2p, b2p = params
    B_pad = y_t.shape[1]
    if B_pad % LANE != 0:
        raise ValueError("B_pad must be a multiple of 128 (pad once outside the solver loop)")
    blk = _pick_block_b(B_pad, block_b)
    grid = (B_pad // blk,)

    return pl.pallas_call(
        odefunc_kernel,
        out_shape=jax.ShapeDtypeStruct((OUT_DIM, B_pad), jnp.float32),
        grid_spec=pltpu.PrefetchScalarGridSpec(
            num_scalar_prefetch=0,
            grid=grid,
            in_specs=[
                # activations: tiled over the padded batch, lane-dense
                pl.BlockSpec((IN_DIM, blk), lambda i: (0, i)),
                # parameters: full arrays, resident for every grid step
                pl.BlockSpec((HID_PAD, IN_DIM), lambda i: (0, 0)),
                pl.BlockSpec((HID_PAD, 1), lambda i: (0, 0)),
                pl.BlockSpec((OUT_DIM, HID_PAD), lambda i: (0, 0)),
                pl.BlockSpec((OUT_DIM, 1), lambda i: (0, 0)),
            ],
            out_specs=pl.BlockSpec((OUT_DIM, blk), lambda i: (0, i)),
        ),
        compiler_params=pltpu.CompilerParams(
            dimension_semantics=("parallel",),
        ),
    )(y_t, w1p, b1p, w2p, b2p)


def odefunc_forward(t, y, w1, b1, w2, b2, *, block_b=MAX_BLOCK_B):
    """PyTorch-parity entry point: ODEFunc.forward(t, y); t is unused. y: (B, 2)."""
    del t
    B = y.shape[0]
    params = prepare_params(w1, b1, w2, b2)

    # Layout conversion happens exactly once here; solver loops should instead
    # keep state transposed/padded and call odefunc_rhs_t directly.
    B_pad = pl.cdiv(B, LANE) * LANE
    y_t = jnp.asarray(y, jnp.float32).T                   # (IN_DIM, B)
    if B_pad != B:
        y_t = jnp.pad(y_t, ((0, 0), (0, B_pad - B)))

    out_t = odefunc_rhs_t(y_t, params, block_b=block_b)
    return out_t[:, :B].T                                 # (B, OUT_DIM)


def init_params(key):
    """Deterministic synthetic parameters with PyTorch Linear-like uniform init."""
    k1, k2, k3, k4 = jax.random.split(key, 4)
    bound1 = 1.0 / (IN_DIM ** 0.5)
    bound2 = 1.0 / (HID_DIM ** 0.5)
    w1 = jax.random.uniform(k1, (HID_DIM, IN_DIM), jnp.float32, -bound1, bound1)
    b1 = jax.random.uniform(k2, (HID_DIM,), jnp.float32, -bound1, bound1)
    w2 = jax.random.uniform(k3, (OUT_DIM, HID_DIM), jnp.float32, -bound2, bound2)
    b2 = jax.random.uniform(k4, (OUT_DIM,), jnp.float32, -bound2, bound2)
    return w1, b1, w2, b2


def odefunc_ref(t, y, w1, b1, w2, b2):
    del t
    h = jnp.maximum(y @ w1.T + b1, 0.0)
    return h @ w2.T + b2


if __name__ == "__main__":
    key = jax.random.PRNGKey(0)
    kp, ky = jax.random.split(key)
    w1, b1, w2, b2 = init_params(kp)

    B = 300  # not a lane multiple: exercises padding; gives a multi-step grid
    y = jax.random.normal(ky, (B, IN_DIM), jnp.float32)
    t = jnp.float32(0.0)  # unused, kept for signature parity with ODEFunc.forward

    out = jax.block_until_ready(odefunc_forward(t, y, w1, b1, w2, b2))
    ref = odefunc_ref(t, y, w1, b1, w2, b2)

    assert out.shape == (B, OUT_DIM)
    assert jnp.allclose(out, ref, atol=1e-5, rtol=1e-5), "Pallas kernel mismatch vs reference"

    print("KERNEL_OK")
</pallas_src>

<mosaic_0001>
module attributes {stable_mosaic.version = 11 : i64} {
  func.func @odefunc_kernel(%arg0: i32, %arg1: memref<2x128xf32, #tpu.memory_space<vmem>>, %arg2: memref<56x2xf32, #tpu.memory_space<vmem>>, %arg3: memref<56x1xf32, #tpu.memory_space<vmem>>, %arg4: memref<2x56xf32, #tpu.memory_space<vmem>>, %arg5: memref<2x1xf32, #tpu.memory_space<vmem>>, %arg6: memref<2x128xf32, #tpu.memory_space<vmem>>) attributes {dimension_semantics = [#tpu.dimension_semantics<parallel>], iteration_bounds = array<i64: 3>, scalar_prefetch = 0 : i64, scratch_operands = 0 : i64, tpu.core_type = #tpu.core_type<tc>, window_params = [{transform_indices = @transform_0, window_bounds = array<i64: 2, 128>}, {pipeline_mode = #tpu.pipeline_mode<synchronous>, transform_indices = @transform_1, window_bounds = array<i64: 56, 2>}, {pipeline_mode = #tpu.pipeline_mode<synchronous>, transform_indices = @transform_2, window_bounds = array<i64: 56, 1>}, {pipeline_mode = #tpu.pipeline_mode<synchronous>, transform_indices = @transform_3, window_bounds = array<i64: 2, 56>}, {pipeline_mode = #tpu.pipeline_mode<synchronous>, transform_indices = @transform_4, window_bounds = array<i64: 2, 1>}, {transform_indices = @transform_5, window_bounds = array<i64: 2, 128>}]} {
    %c0 = arith.constant 0 : index
    %c0_0 = arith.constant 0 : index
    %0 = vector.load %arg2[%c0, %c0_0] : memref<56x2xf32, #tpu.memory_space<vmem>>, vector<56x1xf32>
    %c0_1 = arith.constant 0 : index
    %c1 = arith.constant 1 : index
    %1 = vector.load %arg2[%c0_1, %c1] : memref<56x2xf32, #tpu.memory_space<vmem>>, vector<56x1xf32>
    %c0_2 = arith.constant 0 : index
    %c0_3 = arith.constant 0 : index
    %2 = vector.load %arg3[%c0_2, %c0_3] : memref<56x1xf32, #tpu.memory_space<vmem>>, vector<56x1xf32>
    %c0_4 = arith.constant 0 : index
    %c0_5 = arith.constant 0 : index
    %3 = vector.load %arg4[%c0_4, %c0_5] : memref<2x56xf32, #tpu.memory_space<vmem>>, vector<2x56xf32>
    %c0_6 = arith.constant 0 : index
    %c0_7 = arith.constant 0 : index
    %4 = vector.load %arg5[%c0_6, %c0_7] : memref<2x1xf32, #tpu.memory_space<vmem>>, vector<2x1xf32>
    %c0_8 = arith.constant 0 : index
    %c0_9 = arith.constant 0 : index
    %5 = vector.load %arg1[%c0_8, %c0_9] : memref<2x128xf32, #tpu.memory_space<vmem>>, vector<1x128xf32>
    %c1_10 = arith.constant 1 : index
    %c0_11 = arith.constant 0 : index
    %6 = vector.load %arg1[%c1_10, %c0_11] : memref<2x128xf32, #tpu.memory_space<vmem>>, vector<1x128xf32>
    %7 = vector.broadcast %0 : vector<56x1xf32> to vector<56x128xf32>
    %8 = vector.broadcast %5 : vector<1x128xf32> to vector<56x128xf32>
    %9 = arith.mulf %7, %8 : vector<56x128xf32>
    %10 = vector.broadcast %2 : vector<56x1xf32> to vector<56x128xf32>
    %11 = arith.addf %9, %10 : vector<56x128xf32>
    %12 = vector.broadcast %1 : vector<56x1xf32> to vector<56x128xf32>
    %13 = vector.broadcast %6 : vector<1x128xf32> to vector<56x128xf32>
    %14 = arith.mulf %12, %13 : vector<56x128xf32>
    %15 = arith.addf %11, %14 : vector<56x128xf32>
    %cst = arith.constant 0.000000e+00 : f32
    %16 = vector.broadcast %cst : f32 to vector<56x128xf32>
    %17 = arith.maximumf %15, %16 : vector<56x128xf32>
    %cst_12 = arith.constant dense<0.000000e+00> : vector<2x128xf32>
    %18 = tpu.matmul %3, %17, %cst_12 {dimension_numbers = #tpu.dot_dimension_numbers<[1], [0], [0], [1], [0, 0, 1, 1], [], []>} : vector<2x56xf32>, vector<56x128xf32>, vector<2x128xf32> -> vector<2x128xf32>
    %19 = vector.broadcast %4 : vector<2x1xf32> to vector<2x128xf32>
    %20 = arith.addf %18, %19 : vector<2x128xf32>
    %c0_13 = arith.constant 0 : index
    %c0_14 = arith.constant 0 : index
    %21 = vector.load %arg6[%c0_13, %c0_14] : memref<2x128xf32, #tpu.memory_space<vmem>>, vector<2x128xf32>
    tpu.vector_store %arg6[%c0_13, %c0_14], %20 {strides = array<i32>} : memref<2x128xf32, #tpu.memory_space<vmem>>, vector<2x128xf32>,
    return
  }
  func.func @transform_0(%arg0: i32) -> (i32, i32) {
    %c0_i32 = arith.constant 0 : i32
    %c0_i32_0 = arith.constant 0 : i32
    return %c0_i32, %arg0 : i32, i32
  }
  func.func @transform_1(%arg0: i32) -> (i32, i32) {
    %c0_i32 = arith.constant 0 : i32
    %c0_i32_0 = arith.constant 0 : i32
    %c0_i32_1 = arith.constant 0 : i32
    return %c0_i32, %c0_i32_0 : i32, i32
  }
  func.func @transform_2(%arg0: i32) -> (i32, i32) {
    %c0_i32 = arith.constant 0 : i32
    %c0_i32_0 = arith.constant 0 : i32
    %c0_i32_1 = arith.constant 0 : i32
    return %c0_i32, %c0_i32_0 : i32, i32
  }
  func.func @transform_3(%arg0: i32) -> (i32, i32) {
    %c0_i32 = arith.constant 0 : i32
    %c0_i32_0 = arith.constant 0 : i32
    %c0_i32_1 = arith.constant 0 : i32
    return %c0_i32, %c0_i32_0 : i32, i32
  }
  func.func @transform_4(%arg0: i32) -> (i32, i32) {
    %c0_i32 = arith.constant 0 : i32
    %c0_i32_0 = arith.constant 0 : i32
    %c0_i32_1 = arith.constant 0 : i32
    return %c0_i32, %c0_i32_0 : i32, i32
  }
  func.func @transform_5(%arg0: i32) -> (i32, i32) {
    %c0_i32 = arith.constant 0 : i32
    %c0_i32_0 = arith.constant 0 : i32
    return %c0_i32, %arg0 : i32, i32
  }
}

</mosaic_0001>

<bundles_post_ra>
// kernel: tpu_custom_call.1
= control target key start
LH: loop header
LB: loop body
LE: loop exit
PB: predicated region body
PF: predicated region fallthrough
CT: control target
= control target key end

     0   :  { %10 = vsyncpa [#allocation3], 0  ;;  %s888_s0 = inlined_call_operand.vmem [shape: f32[2,384], index: 0, kind: input, shape index: {}]   ;;  %s889_s1 = inlined_call_operand.vmem [shape: f32[56,2], index: 1, kind: input, shape index: {}]   ;;  %s890_s2 = inlined_call_operand.vmem [shape: f32[56,1], index: 2, kind: input, shape index: {}]   ;;  %s891_s3 = inlined_call_operand.vmem [shape: f32[2,56], index: 3, kind: input, shape index: {}]   ;;  %s892_s4 = inlined_call_operand.vmem [shape: f32[2,1], index: 4, kind: input, shape index: {}]   ;;  %s893_s5 = inlined_call_operand.hbm [shape: f32[2,384], index: 5, kind: output, shape index: {}]  }
   0x1   :  { %12 = vsyncpa [#allocation3 + $0x1], 0  ;;  %s735_s18 = smov 0   ;;  %s737_s19 = smov 0  }
   0x2   :  { %s739_s20 = smov 0   ;;  %s741_s21 = smov 0  }
   0x3 LB: > { %s756_s22 = sadd.s32 4294967295, %s697_s21   ;;  %s532_s23 = sadd.s32 4294967294, %s697_s21   ;;  %s697_s21 = sphi %s741_s21, %s899_s21   ;;  %s693_s20 = sphi %s739_s20, %s898_s20   ;;  %s689_s19 = sphi %s737_s19, %s897_s19   ;;  %s685_s18 = sphi %s735_s18, %s896_s18  }
   0x4   : > { %s760_s24 = sadd.s32 1, %s697_s21   ;;  %s135_s25 = sadd.s32 1, %s693_s20 }
   0x5   : > { %s132_s26 = ssub.s32 %s697_s21, %s760_s24  ;;  %p145_p0 = scmp.ne.s32.totalorder %s693_s20, %s689_s19 }
   0x6   : > { %p133_p1 = scmp.eq.s32.totalorder %s132_s26, 0  ;;  %p146_p2 = scmp.eq.s32.totalorder %s756_s22, 2 }
   0x7   : > { %p151_p3 = scmp.ne.s32.totalorder %s689_s19, %s685_s18  ;;  %p152_p4 = scmp.eq.s32.totalorder %s532_s23, 2 }
   0x8   : > { %s771_s27 = scalar_select %p133_p1, %s693_s20, %s135_s25  }
   0x9   : > { %p773_p5 = por %p146_p2, %p145_p0  ;;  %p777_p6 = por %p152_p4, %p151_p3 }
   0xa   : > { %p535_p7 = scmp.ge.s32.totalorder %s697_s21, 1  ;;  %p189_p8 = scmp.lt.s32.totalorder %s697_s21, 4 }
   0xc   : > { %p190_p9 = pnand %p535_p7, %p189_p8 }
   0xd   : > { %v227_v0 = vld [vmem:[%s890_s2] sm:$0xff] (!%p190_p9)  ;;  %v699_v2 = vmov (!%p190_p9), 0   ;;  %v228_v3 = vld [vmem:[%s890_s2 + $0x8] sm:$0xff] (!%p190_p9)  ;;  %v223_v5 = vld [vmem:[%s889_s1 + $0x18] sm:$0xff] (!%p190_p9)  ;;  %v700_v6 = vmov (!%p190_p9), 1   ;;  %v701_v12 = vmov (!%p190_p9), 0.0|0.0  }
   0xe   : > { %193 = sbr.rel (%p190_p9) target bundleno = 433 (0x1b1), region = 40  ;;  %v220_v1 = vld [vmem:[%s889_s1] sm:$0xff] (!%p190_p9)  ;;  %624 = vset.pattern.permute.xlu1 (!%p190_p9), %v699_v2  ;;  %623 = vset.pattern.permute.xlu0 (!%p190_p9), %v699_v2  ;;  %v221_v4 = vld [vmem:[%s889_s1 + $0x8] sm:$0xff] (!%p190_p9)  ;;  %v222_v8 = vld [vmem:[%s889_s1 + $0x10] sm:$0xff] (!%p190_p9)  ;;  %vm702_vm0 = vmmov (!%p190_p9), 0   ;;  %v703_v17 = vmov (!%p190_p9), 0.0  }
   0xf   : > { %286 = vperm.xlu1 (!%p190_p9), %624, %v227_v0   ;;  %240 = vperm.xlu0 (!%p190_p9), %623, %v220_v1   ;;  %v225_v7 = vld [vmem:[%s889_s1 + $0x28] sm:$0xff] (!%p190_p9)  ;;  %v229_v9 = vld [vmem:[%s890_s2 + $0x10] sm:$0xff] (!%p190_p9)  ;;  %v230_v10 = vld [vmem:[%s890_s2 + $0x18] sm:$0xff] (!%p190_p9)  ;;  %p216_p10 = scmp.lt.s32.totalorder (!%p190_p9), %s756_s22, 2  ;;  %vm384_vm1 = vcmask (!%p190_p9), 457728   ;;  %s213_s10 = sand.u32 (!%p190_p9), 1, %s689_s19  }
  0x10   : > { %v224_v11 = vld [vmem:[%s889_s1 + $0x20] sm:$0xff] (!%p190_p9)  ;;  %570 = vmatprep.subr.bf16.mxu0 (!%p190_p9), %v701_v12  ;;  %v233_v13 = vld [vmem:[%s890_s2 + $0x30] sm:$0xff] (!%p190_p9)  ;;  %v232_v15 = vld [vmem:[%s890_s2 + $0x28] sm:$0xff] (!%p190_p9)  ;;  %567 = vmatprep.mubr.msk.f32.mxu0 (!%p190_p9), %vm702_vm0, %v703_v17  ;;  %s536_s11 = sshll.u32 (!%p190_p9), %s213_s10, 1  ;;  %s542_s12 = sshll.u32 (!%p190_p9), %s756_s22, 5 }
  0x11   : > { %v231_v14 = vld [vmem:[%s890_s2 + $0x20] sm:$0xff] (!%p190_p9)  ;;  %v226_v16 = vld [vmem:[%s889_s1 + $0x30] sm:$0xff] (!%p190_p9)  ;;  %s215_s13 = scalar_lea.vmem (!%p190_p9), [#allocation2], %s536_s11  ;;  %s846_s17 = scalar_lea.hbm (!%p190_p9), %s893_s5, %s542_s12 }
  0x12   : > { %v235_v18 = vld [vmem:[%s892_s4] sm:$0x3] (!%p190_p9)  ;;  %s473_s14 = sshll.u32 (!%p190_p9), %s215_s13, 4  ;;  %s460_s23 = scalar_lea.sflag (!%p190_p9), [#allocation3], %s213_s10  ;;  %s848_s14 = int_to_ptr.vmem [resolvable:$true] %s473_s14 }
  0x13   : > { %291 = vperm.xlu1 (!%p190_p9), %624, %v228_v3   ;;  %245 = vperm.xlu0 (!%p190_p9), %623, %v221_v4  }
  0x15   : > { %s217_s25 = scalar_select %p216_p10, %s756_s22, 2 }
  0x16   : > { %s704_s22 = smov [#allocation2]  }
  0x17   : > { %625 = vset.pattern.permute.xlu1 %v700_v6  ;;  %255 = vperm.xlu0 %623, %v223_v5   ;;  %s537_s26 = sshll.u32 %s217_s25, 1  ;;  %s635_s25 = scalar_lea.vmem %s848_s14, 32 }
  0x18   : > { %331 = vperm.xlu1 %625, %v221_v4   ;;  %s219_s7 = scalar_lea.vmem %s888_s0, %s537_s26  ;;  %p636_p11 = scmp.ne.s32.totalorder %s848_s14, %s635_s25 }
  0x19   : > { %v538_v25 = vld [vmem:[%s219_s7] ss:$0 sm:$0xff]  ;;  %v539_v26 = vld [vmem:[%s219_s7 + $0x1] ss:$0 sm:$0xff]  ;;  %s639_s26 = sshll.u32 %s704_s22, 4  ;;  %s640_s26 = int_to_ptr.vmem [resolvable:$false] %s639_s26 }
  0x1a   : > { %p637_p12 = pnand %p636_p11, %p773_p5  ;;  %s641_s30 = scalar_lea.vmem %s640_s26, 64 }
  0x1b   : > { %265 = vperm.xlu0 %623, %v225_v7   ;;  %p642_p0 = scmp.lt.s32.totalorder %s848_s14, %s640_s26  ;;  %p643_p1 = scmp.lt.s32.totalorder %s641_s30, %s635_s25 }
  0x1c   : > { %626 = vset.pattern.permute.xlu1 %v699_v2  ;;  %p638_p13 = pneg %p637_p12 }
  0x1d   : > { %250 = vperm.xlu1 %626, %v222_v8   ;;  %p644_p2 = por %p643_p1, %p642_p0 }
  0x1f   : > { %629 = vset.pattern.permute.xlu0 %v700_v6  ;;  %p645_p3 = pnand %p644_p2, %p638_p13 }
  0x20   : > { %327 = vperm.xlu0 %629, %v220_v1  }
  0x21   : > { %296 = vperm.xlu1 %626, %v229_v9  }
  0x24   : > { %335 = vperm.xlu0 %629, %v222_v8  }
  0x25   : > { %301 = vperm.xlu1 %626, %v230_v10  }
  0x28   : > { %343 = vperm.xlu0 %629, %v224_v11  }
  0x29   : > { %627 = vset.pattern.permute.xlu1 %v700_v6 }
  0x2a   : > { %339 = vperm.xlu1 %627, %v223_v5  }
  0x2c   : > { %632 = vset.pattern.permute.xlu0 %v699_v2 }
  0x2d   : > { %316 = vperm.xlu0 %632, %v233_v13  }
  0x2e   : > { %628 = vset.pattern.permute.xlu1 %v699_v2 }
  0x2f   : > { %260 = vperm.xlu1 %628, %v224_v11  }
  0x33   : > { %306 = vperm.xlu1 %628, %v231_v14  }
  0x37   : > { %311 = vperm.xlu1 %628, %v232_v15  }
  0x3b   : > { %630 = vset.pattern.permute.xlu1 %v700_v6 }
  0x3c   : > { %347 = vperm.xlu1 %630, %v225_v7  }
  0x40   : > { %631 = vset.pattern.permute.xlu1 %v699_v2 }
  0x41   : > { %270 = vperm.xlu1 %631, %v226_v16  }
  0x45   : > { %633 = vset.pattern.permute.xlu1 %v700_v6 }
  0x46   : > { %351 = vperm.xlu1 %633, %v226_v16   ;;  %v234_v16 = vld [vmem:[%s891_s3] sm:$0x3] }
  0x4a   : > { %634 = vset.pattern.permute.xlu1 %v699_v2 }
  0x4b   : > { %381 = vperm.xlu1 %634, %v235_v18  }
  0x8e   : > { %v287_v19 = vpop.permute.xlu1 %286  ;;  %v241_v20 = vpop.permute.xlu0 %240 }
  0x8f   : > { %v277_v29 = vmul.f32 %v538_v25, %v241_v20 }
  0x91   : > { %v319_v34 = vadd.f32 %v287_v19, %v277_v29 }
  0x92   : > { %v292_v21 = vpop.permute.xlu1 %291  ;;  %v246_v22 = vpop.permute.xlu0 %245 }
  0x93   : > { %v278_v27 = vmul.f32 %v538_v25, %v246_v22 }
  0x95   : > { %v320_v32 = vadd.f32 %v292_v21, %v278_v27 }
  0x96   : > { %v256_v23 = vpop.permute.xlu0 %255 }
  0x97   : > { %v332_v24 = vpop.permute.xlu1 %331  ;;  %v280_v43 = vmul.f32 %v538_v25, %v256_v23 }
  0x98   : > { %v359_v30 = vmul.f32 %v539_v26, %v332_v24 }
  0x9a   : > { %v266_v28 = vpop.permute.xlu0 %265  ;;  %v366_v35 = vadd.f32 %v359_v30, %v320_v32 }
  0x9b   : > { %v282_v63 = vmul.f32 %v538_v25, %v266_v28 }
  0x9c   : > { %v251_v31 = vpop.permute.xlu1 %250  ;;  %v373_v40 = vmax.f32 %v366_v35, 0.0 }
  0x9d   : > { %v279_v44 = vmul.f32 %v538_v25, %v251_v31 }
  0x9f   : > { %v328_v33 = vpop.permute.xlu0 %327 }
  0xa0   : > { %v358_v36 = vmul.f32 %v539_v26, %v328_v33  ;;  %v297_v37 = vpop.permute.xlu1 %296 }
  0xa1   : > { %v321_v47 = vadd.f32 %v297_v37, %v279_v44 }
  0xa2   : > { %v365_v38 = vadd.f32 %v358_v36, %v319_v34 }
  0xa3   : > { %v336_v39 = vpop.permute.xlu0 %335 }
  0xa4   : > { %v372_v41 = vmax.f32 %v365_v38, 0.0  ;;  %v302_v42 = vpop.permute.xlu1 %301  ;;  %v360_v45 = vmul.f32 %v539_v26, %v336_v39 }
  0xa5   : > { %v322_v50 = vadd.f32 %v302_v42, %v280_v43 }
  0xa6   : > { %v571_v46 = vpack.c.bf16 %v373_v40, %v372_v41  ;;  %v367_v49 = vadd.f32 %v360_v45, %v321_v47 }
  0xa7   : > { %v344_v58 = vpop.permute.xlu0 %343 }
  0xa8   : > { %572 = vmatpush3.bf16.msra.mxu0 %v571_v46  ;;  %v374_v53 = vmax.f32 %v367_v49, 0.0  ;;  %v362_v62 = vmul.f32 %v539_v26, %v344_v58 }
  0xa9   : > { %v340_v48 = vpop.permute.xlu1 %339  ;;  %573 = vmatprep.subr.bf16.mxu0 %v701_v12 }
  0xaa   : > { %v361_v51 = vmul.f32 %v539_v26, %v340_v48 }
  0xac   : > { %v368_v52 = vadd.f32 %v361_v51, %v322_v50  ;;  %v317_v10 = vpop.permute.xlu0 %316 }
  0xae   : > { %v375_v54 = vmax.f32 %v368_v52, 0.0  ;;  %v261_v55 = vpop.permute.xlu1 %260 }
  0xaf   : > { %v281_v59 = vmul.f32 %v538_v25, %v261_v55 }
  0xb0   : > { %v574_v56 = vpack.c.bf16 %v375_v54, %v374_v53 }
  0xb2   : > { %v307_v57 = vpop.permute.xlu1 %306  ;;  %575 = vmatpush3.bf16.msra.mxu0 %v574_v56 }
  0xb3   : > { %576 = vmatprep.subr.bf16.mxu0 %v701_v12  ;;  %v323_v61 = vadd.f32 %v307_v57, %v281_v59 }
  0xb5   : > { %v369_v1 = vadd.f32 %v362_v62, %v323_v61 }
  0xb6   : > { %v312_v60 = vpop.permute.xlu1 %311 }
  0xb7   : > { %v324_v2 = vadd.f32 %v312_v60, %v282_v63  ;;  %v376_v5 = vmax.f32 %v369_v1, 0.0 }
  0xbb   : > { %v348_v0 = vpop.permute.xlu1 %347 }
  0xbc   : > { %v363_v3 = vmul.f32 %v539_v26, %v348_v0 }
  0xbe   : > { %v370_v4 = vadd.f32 %v363_v3, %v324_v2 }
  0xc0   : > { %v377_v6 = vmax.f32 %v370_v4, 0.0  ;;  %v271_v7 = vpop.permute.xlu1 %270 }
  0xc1   : > { %v283_v8 = vmul.f32 %v538_v25, %v271_v7 }
  0xc2   : > { %v577_v9 = vpack.c.bf16 %v377_v6, %v376_v5 }
  0xc3   : > { %v325_v12 = vadd.f32 %v317_v10, %v283_v8 }
  0xc4   : > { %578 = vmatpush3.bf16.msra.mxu0 %v577_v9 }
  0xc5   : > { %v352_v11 = vpop.permute.xlu1 %351  ;;  %565 = vmatprep.subr.mxu0 %v703_v17 }
  0xc6   : > { %v364_v13 = vmul.f32 %v539_v26, %v352_v11 }
  0xc8   : > { %v371_v14 = vadd.f32 %v364_v13, %v325_v12 }
  0xca   : > { %v378_v15 = vmax.f32 %v371_v14, 0.0  ;;  %v382_v18 = vpop.permute.xlu1 %381 }
  0xcc   : > { %566 = vmatpush3.msra.mxu0 %v378_v15 }
  0xcd   : > { %568 = vmatmul.mubr.msk.f32.vlgmr.msra.gmra.mrb[0].mxu0 %vm384_vm1, %v234_v16 }
 0x1a0   : > { %v454_v19 = vpop.f32.mrb[0].mxu0 }
 0x1a1   : > { %v455_v17 = vadd.f32 %v454_v19, %v382_v18  ;;  %v569_v20 = vpop.f32.mrb[1].mxu0 }
 0x1a3   : > { %458 = vst [vmem:[%s215_s13] sm:$0x3] %v455_v17 }
 0x1a4   : > { %648 = shalt.err (!%p645_p3)
}
 0x1a5   : > { %s649_s6 = scalar_lea.hbm %s846_s17, 32  ;;  %s653_s9 = scalar_lea.hbm %s893_s5, 96 }
 0x1a6   : > { %p650_p4 = scmp.ne.s32.totalorder %s846_s17, %s649_s6  ;;  %p654_p9 = scmp.lt.u32.totalorder %s846_s17, %s893_s5 }
 0x1a7   : > { %p655_p10 = scmp.lt.u32.totalorder %s653_s9, %s649_s6  ;;  %p657_p12 = scmp.lt.u32.totalorder %s649_s6, %s846_s17 }
 0x1a8   : > { %p651_p7 = pnand %p650_p4, %p773_p5 }
 0x1a9   : > { %p656_p11 = por %p655_p10, %p654_p9 }
 0x1aa   : > { %p652_p8 = pneg %p651_p7 }
 0x1ab   : > { %p658_p13 = por %p657_p12, %p656_p11 }
 0x1ad   : > { %p659_p0 = pnand %p658_p13, %p652_p8 }
 0x1af   : > { %662 = shalt.err (!%p659_p0)
}
 0x1b0   : > { %579 = dma.vmem_to_hbm [thread:$0]  (%p773_p5), %s848_s14, 32, %s846_s17, %s460_s23  }
 0x1b1 PF: > { %p585_p1 = scmp.ge.s32.totalorder %s697_s21, 2  ;;  %s485_s12 = sand.u32 1, %s685_s18  }
 0x1b2   : > { %s486_s13 = scalar_lea.sflag [#allocation3], %s485_s12 }
 0x1b3   : > { %p582_p2 = pnand %p585_p1, %p777_p6 }
 0x1b5   : > { %680 = dma.done.wait (!%p582_p2), %s486_s13, 32  }
 0x1b6   : > { %682 = vsyncadd (!%p582_p2), %s486_s13, 4294967264  ;;  %p15_p3 = scmp.ge.s32.totalorder %s760_s24, 5   ;;  %s896_s18 = smov %s689_s19 }
 0x1b7   : > { %s897_s19 = smov %s693_s20  ;;  %s898_s20 = smov %s771_s27 }
 0x1b8   : > { %s899_s21 = smov %s760_s24  ;;  %17 = sbr.rel (!%p15_p3) target bundleno = 3 (0x3), region = 75 }
 0x1bf   :  { %491 = vsyncpa [#allocation3], 1 }
 0x1c0   :  { %493 = vsyncpa [#allocation3 + $0x1], 1 }

</bundles_post_ra>
